<compile_context>
chip_gen: v5e
topology: v5e:2x2
jax: 0.10.0
libtpu: 0.0.40
codegen_flags: <defaults>
</compile_context>

<pallas_src>
import jax
import jax.numpy as jnp
from jax.experimental import pallas as pl
from jax.experimental.pallas import tpu as pltpu


def _residual_kernel(x_ref, y_ref, o_ref):
    # Pure elementwise add on the current VMEM tile (VPU).
    o_ref[...] = x_ref[...] + y_ref[...]


_LANE_CANDIDATES = (4096, 2048, 1024, 512, 256, 128)   # lane-dense last dims
_DEFAULT_MIN_PALLAS_BYTES = 512 * 1024                 # below this, XLA add wins


def _sublane_multiple(dtype) -> int:
    # Required second-minor tile multiple per dtype width.
    return {4: 8, 2: 16, 1: 32}.get(jnp.dtype(dtype).itemsize, 8)


def _round_up(v: int, m: int) -> int:
    return ((v + m - 1) // m) * m


def _chip_tuning():
    """Per-generation knobs: (target tile bytes per input, TCs sharing the grid)."""
    try:
        kind = (jax.devices()[0].device_kind or "").lower()
    except Exception:
        kind = ""
    if "v7" in kind or "7x" in kind:
        # v7x: 2 TensorCores, ~3.2 TB/s HBM -> bigger tiles, core-balanced grid.
        return 4 * 1024 * 1024, 2
    if "v5p" in kind or "v4" in kind:
        # Megacore chips: 2 TCs share the "parallel" grid axis.
        return 2 * 1024 * 1024, 2
    # v5e / v6e / unknown: single TC; 2 MiB tiles also fit v5e's 16 MiB default.
    return 2 * 1024 * 1024, 1


def _pick_tile_rows(rows, lane, itemsize, m, target_tile_bytes, num_cores):
    """Row-tile (second-minor block dim). Multiple of m, or the full row count."""
    if rows <= m:
        return rows                       # single full-extent block (always legal)

    bytes_per_row = lane * itemsize
    tr_cap = max(m, (target_tile_bytes // bytes_per_row) // m * m)
    tr_cap = min(tr_cap, _round_up(rows, m))

    if tr_cap >= rows:
        # Whole array fits in one tile under the target size.
        if num_cores > 1 and rows >= 2 * m:
            # Split so every TensorCore gets work.
            tr_cap = min(tr_cap, max(m, _round_up(pl.cdiv(rows, num_cores), m)))
        else:
            return rows

    # Prefer the largest tr <= tr_cap (multiple of m) that exactly divides rows
    # (no masked vst.msk / padded DMA on the last step).  Among exact divisors,
    # prefer a grid length that is a multiple of num_cores (balanced sharding).
    best_divisor = None
    tr = tr_cap
    while tr >= m:
        if rows % tr == 0:
            if best_divisor is None:
                best_divisor = tr
            if (rows // tr) % num_cores == 0:
                return tr                  # exact divisor + core-balanced grid
        tr -= m
    if best_divisor is not None:
        return best_divisor                # exact divisor, possibly odd grid

    # Fallback: no exact divisor exists; accept one masked partial last block
    # but keep the grid length a multiple of num_cores where possible.
    g = _round_up(max(num_cores, pl.cdiv(rows, tr_cap)), num_cores)
    tr = max(m, _round_up(pl.cdiv(rows, g), m))
    return min(tr, tr_cap)


def residual(x: jax.Array, y: jax.Array, *,
             min_pallas_bytes: int = _DEFAULT_MIN_PALLAS_BYTES,
             donate_x: bool = False) -> jax.Array:
    """Computes x + y (Residual.forward). x, y must have the same shape/dtype.

    donate_x only reduces HBM *footprint* (aliases x's buffer as the output if
    the caller really donates x); it does not reduce HBM traffic.
    """
    assert x.shape == y.shape, (x.shape, y.shape)
    assert x.dtype == y.dtype, (x.dtype, y.dtype)

    total = x.size
    itemsize = jnp.dtype(x.dtype).itemsize
    total_bytes = total * itemsize

    # Tiny / empty tensors: launch + pipeline warmup dwarfs the add.
    # Non-128-divisible element counts: no lane-dense reshape exists; XLA's
    # fused add is already HBM-roofline bound there.
    if total == 0 or total_bytes < min_pallas_bytes or total % 128 != 0:
        return x + y

    # Lane-dense flatten: largest multiple of 128 (<= 4096) dividing the size.
    lane = next(l for l in _LANE_CANDIDATES if total % l == 0)
    rows = total // lane
    m = _sublane_multiple(x.dtype)

    target_tile_bytes, num_cores = _chip_tuning()
    tr = _pick_tile_rows(rows, lane, itemsize, m, target_tile_bytes, num_cores)
    grid = (pl.cdiv(rows, tr),)            # partial last block (if any) is masked

    x2 = x.reshape(rows, lane)
    y2 = y.reshape(rows, lane)

    # 2 inputs + 1 output, double-buffered = 6 tiles; +20% + 1 MiB for Mosaic
    # internal scratch; clamp to v7x physical VMEM (64 MiB).
    tile_bytes = tr * lane * itemsize
    vmem_limit = int(6 * tile_bytes * 1.2) + (1 << 20)
    vmem_limit = max(4 << 20, min(vmem_limit, 64 << 20))

    cost = pl.CostEstimate(flops=total, transcendentals=0,
                           bytes_accessed=3 * total_bytes)

    out2 = pl.pallas_call(
        _residual_kernel,
        out_shape=jax.ShapeDtypeStruct((rows, lane), x.dtype),
        grid_spec=pltpu.PrefetchScalarGridSpec(
            num_scalar_prefetch=0,
            grid=grid,
            in_specs=[
                pl.BlockSpec((tr, lane), lambda i: (i, 0)),
                pl.BlockSpec((tr, lane), lambda i: (i, 0)),
            ],
            out_specs=pl.BlockSpec((tr, lane), lambda i: (i, 0)),
        ),
        compiler_params=pltpu.CompilerParams(
            dimension_semantics=("parallel",),
            vmem_limit_bytes=vmem_limit,
        ),
        cost_estimate=cost,
        input_output_aliases={0: 0} if donate_x else {},
    )(x2, y2)

    return out2.reshape(x.shape)


if __name__ == "__main__":
    key = jax.random.PRNGKey(0)

    def make(shape, dtype, k):
        kx, ky = jax.random.split(k)
        xv = jax.random.normal(kx, shape, dtype=jnp.float32).astype(dtype)
        yv = jax.random.normal(ky, shape, dtype=jnp.float32).astype(dtype)
        return xv, yv

    # (shape, dtype, min_pallas_bytes); min_pallas_bytes=0 forces the Pallas path.
    cases = [
        ((2, 4, 16, 16), jnp.float32, 0),      # small NCHW, single full block
        ((4, 8, 64, 128), jnp.float32, 0),     # lane-dense tiling
        ((5, 4, 16, 128), jnp.float32, 0),     # rows not a multiple of 8, full block
        ((2, 4, 32, 32), jnp.bfloat16, 0),     # sub-32-bit dtype
        ((8, 8, 128, 128), jnp.float32, 0),    # multi-step grid, exact divisor tr
        ((131, 32, 128), jnp.float32, 0),      # prime row count -> masked last block
        ((2, 4, 16, 16), jnp.float32, None),   # default threshold -> XLA bypass
    ]

    keys = jax.random.split(key, len(cases))
    for (shape, dtype, min_bytes), k in zip(cases, keys):
        x, y = make(shape, dtype, k)
        kwargs = {} if min_bytes is None else {"min_pallas_bytes": min_bytes}
        out = jax.block_until_ready(residual(x, y, **kwargs))
        ref = x + y
        assert out.shape == ref.shape and out.dtype == ref.dtype, (shape, dtype)
        tol = 1e-6 if dtype == jnp.float32 else 1e-2
        assert jnp.allclose(out.astype(jnp.float32), ref.astype(jnp.float32),
                            atol=tol, rtol=tol), (shape, dtype)

    print("KERNEL_OK")
</pallas_src>

<mosaic_0001>
module attributes {stable_mosaic.version = 11 : i64} {
  func.func @_residual_kernel(%arg0: i32, %arg1: memref<1x2048xf32, #tpu.memory_space<vmem>>, %arg2: memref<1x2048xf32, #tpu.memory_space<vmem>>, %arg3: memref<1x2048xf32, #tpu.memory_space<vmem>>) attributes {dimension_semantics = [#tpu.dimension_semantics<parallel>], iteration_bounds = array<i64: 1>, scalar_prefetch = 0 : i64, scratch_operands = 0 : i64, tpu.core_type = #tpu.core_type<tc>, window_params = [{transform_indices = @transform_0, window_bounds = array<i64: 1, 2048>}, {transform_indices = @transform_1, window_bounds = array<i64: 1, 2048>}, {transform_indices = @transform_2, window_bounds = array<i64: 1, 2048>}]} {
    %c0 = arith.constant 0 : index
    %c0_0 = arith.constant 0 : index
    %0 = vector.load %arg1[%c0, %c0_0] : memref<1x2048xf32, #tpu.memory_space<vmem>>, vector<1x2048xf32>
    %c0_1 = arith.constant 0 : index
    %c0_2 = arith.constant 0 : index
    %1 = vector.load %arg2[%c0_1, %c0_2] : memref<1x2048xf32, #tpu.memory_space<vmem>>, vector<1x2048xf32>
    %2 = arith.addf %0, %1 : vector<1x2048xf32>
    %c0_3 = arith.constant 0 : index
    %c0_4 = arith.constant 0 : index
    %3 = vector.load %arg3[%c0_3, %c0_4] : memref<1x2048xf32, #tpu.memory_space<vmem>>, vector<1x2048xf32>
    tpu.vector_store %arg3[%c0_3, %c0_4], %2 {strides = array<i32>} : memref<1x2048xf32, #tpu.memory_space<vmem>>, vector<1x2048xf32>,
    return
  }
  func.func @transform_0(%arg0: i32) -> (i32, i32) {
    %c0_i32 = arith.constant 0 : i32
    %c0_i32_0 = arith.constant 0 : i32
    return %arg0, %c0_i32 : i32, i32
  }
  func.func @transform_1(%arg0: i32) -> (i32, i32) {
    %c0_i32 = arith.constant 0 : i32
    %c0_i32_0 = arith.constant 0 : i32
    return %arg0, %c0_i32 : i32, i32
  }
  func.func @transform_2(%arg0: i32) -> (i32, i32) {
    %c0_i32 = arith.constant 0 : i32
    %c0_i32_0 = arith.constant 0 : i32
    return %arg0, %c0_i32 : i32, i32
  }
}

</mosaic_0001>

<bundles_post_ra>
// kernel: tpu_custom_call.1
= control target key start
LH: loop header
LB: loop body
LE: loop exit
PB: predicated region body
PF: predicated region fallthrough
CT: control target
= control target key end

     0   :  { %7 = vsyncpa [#allocation3], 0  ;;  %s174_s0 = inlined_call_operand.hbm [shape: f32[1,2048], index: 0, kind: input, shape index: {}]   ;;  %s175_s1 = inlined_call_operand.hbm [shape: f32[1,2048], index: 1, kind: input, shape index: {}]   ;;  %s176_s2 = inlined_call_operand.hbm [shape: f32[1,2048], index: 2, kind: output, shape index: {}]  }
   0x1   :  { %8 = vsyncpa [#allocation6], 0 }
   0x2   :  { %9 = vsyncpa [#allocation4], 0  ;;  %s15_s11 = sshll.u32 %s174_s0, 4  ;;  %s147_s12 = smov [#allocation2]   ;;  %s16_s11 = int_to_ptr.hbm [resolvable:$true] %s15_s11 }
   0x3   :  { %s17_s13 = sshll.u32 %s147_s12, 4  ;;  %s26_s16 = sshll.u32 %s175_s1, 4  ;;  %s18_s13 = int_to_ptr.vmem [resolvable:$true] %s17_s13  ;;  %s27_s16 = int_to_ptr.hbm [resolvable:$true] %s26_s16 }
   0x4   :  { %20 = dma.hbm_to_vmem [thread:$0]  %s16_s11, 256, %s18_s13, [#allocation3]  }
   0x5   :  { %s148_s17 = smov [#allocation5]  }
   0x6   :  { %s28_s18 = sshll.u32 %s148_s17, 4  ;;  %s29_s18 = int_to_ptr.vmem [resolvable:$true] %s28_s18 }
   0x7   :  { %31 = dma.hbm_to_vmem [thread:$0]  %s27_s16, 256, %s29_s18, [#allocation6]  }
   0x8   :  { %141 = dma.done.wait [#allocation3], 256  }
   0x9   :  { %142 = vsyncadd [#allocation3], 4294967040 }
   0xa   :  { %143 = dma.done.wait [#allocation6], 256  }
   0xb   :  { %144 = vsyncadd [#allocation6], 4294967040  ;;  %s149_s19 = smov [#allocation7]   ;;  %s55_s22 = sshll.u32 %s176_s2, 4  ;;  %v40_v0 = vld [vmem:[#allocation2] sm:$0xff]  ;;  %v42_v1 = vld [vmem:[#allocation5] sm:$0xff]  ;;  %s56_s22 = int_to_ptr.hbm [resolvable:$true] %s55_s22 }
   0xc   :  { %s53_s0 = sshll.u32 %s149_s19, 4  ;;  %v41_v2 = vld [vmem:[#allocation2 + $0x8] sm:$0xff]  ;;  %v44_v3 = vadd.f32 %v42_v1, %v40_v0  ;;  %v43_v4 = vld [vmem:[#allocation5 + $0x8] sm:$0xff]  ;;  %s54_s0 = int_to_ptr.vmem [resolvable:$true] %s53_s0 }
   0xd   :  { %v45_v5 = vadd.f32 %v43_v4, %v41_v2 }
   0xe   :  { %46 = vst [vmem:[#allocation7] sm:$0xff] %v44_v3 }
   0xf   :  { %47 = vst [vmem:[#allocation7 + $0x8] sm:$0xff] %v45_v5 }
  0x10   :  { %58 = dma.vmem_to_hbm [thread:$0]  %s54_s0, 256, %s56_s22, [#allocation4]  }
  0x11   :  { %145 = dma.done.wait [#allocation4], 256  }
  0x12   :  { %146 = vsyncadd [#allocation4], 4294967040 }
  0x13   :  { %63 = vsyncpa [#allocation3], 1 }
  0x14   :  { %64 = vsyncpa [#allocation6], 1 }
  0x15   :  { %65 = vsyncpa [#allocation4], 1 }

</bundles_post_ra>
